<compile_context>
chip_gen: v6e
topology: v6e:2x2x1
jax: 0.10.0
libtpu: 0.0.40
codegen_flags: <defaults>
</compile_context>

<pallas_src>
import functools

import jax
import jax.numpy as jnp
from jax.experimental import pallas as pl
from jax.experimental.pallas import tpu as pltpu

LANE = 128      # hidden/output feature dims padded to multiples of this
SUBLANE = 8     # batch dim padded to multiples of this


def _round_up(x, m):
    return ((x + m - 1) // m) * m


# ----------------------------------------------------------------------------
# Fused kernel: one grid step = one batch tile through ALL layers.
# Intermediates h1/h2 never touch HBM.
# ----------------------------------------------------------------------------
def _mlp_fused_kernel(*refs, n_linear, hidden_activation, output_activation):
    # refs = (x_ref, w0, b0, w1, b1, ..., w_{L-1}, b_{L-1}, o_ref)
    x_ref = refs[0]
    o_ref = refs[-1]
    p = refs[1:-1]

    h = x_ref[...]                                     # bf16 (bm, K)
    for li in range(n_linear):
        w = p[2 * li][...]                             # bf16 (Din, Dout_pad)
        b = p[2 * li + 1][...]                         # f32  (1,   Dout_pad)
        # bf16 x bf16 on the MXU, f32 accumulate; elementwise math stays f32.
        h = jnp.dot(h.astype(jnp.bfloat16), w,
                    preferred_element_type=jnp.float32) + b
        act = output_activation if li == n_linear - 1 else hidden_activation
        if act == "relu":
            h = jnp.maximum(h, 0.0)
        elif act == "sigmoid":
            # sigmoid(x) = 1 / (1 + exp(-x)); exp + reciprocal both go to EUP.
            h = pl.reciprocal(1.0 + jnp.exp(-h), approx=True)
        elif act == "none":
            pass
        else:
            raise ValueError(f"unsupported activation: {act}")
        # TODO(synk): training-mode dropout not implemented (eval => identity).
    o_ref[...] = h.astype(o_ref.dtype)


# ----------------------------------------------------------------------------
# One-time parameter preparation (outside the hot path).
# ----------------------------------------------------------------------------
def prepare_params(params):
    """Pad hidden/output dims to multiples of 128 (lane-dense), cast weights
    to bf16 (MXU operands), keep biases as f32 (1, Dout_pad) rows.
    The input feature dim is intentionally NOT padded (full-extent block dims
    are legal; avoids inflating the x HBM read).
    Returns (prepped_params_tuple, real_output_dim)."""
    dims = [params[0][0].shape[0]] + [w.shape[1] for (w, _) in params]
    for li, (w, _) in enumerate(params):
        assert w.shape[0] == dims[li], "layer dims must chain"
    dims_pad = [dims[0]] + [_round_up(d, LANE) for d in dims[1:]]

    prepped = []
    for li, (w, b) in enumerate(params):
        d_in, d_out = w.shape
        w_p = jnp.pad(
            w.astype(jnp.float32),
            ((0, dims_pad[li] - d_in), (0, dims_pad[li + 1] - d_out)),
        ).astype(jnp.bfloat16)
        b_p = jnp.pad(
            b.astype(jnp.float32).reshape(1, d_out),
            ((0, 0), (0, dims_pad[li + 1] - d_out)),
        )
        prepped.append((w_p, b_p))
    return tuple(prepped), dims[-1]


# ----------------------------------------------------------------------------
# Hot path: pad x over batch, run fused kernel tiled over M, slice output.
# ----------------------------------------------------------------------------
@functools.partial(
    jax.jit,
    static_argnames=("out_dim", "block_m", "out_dtype",
                     "hidden_activation", "output_activation"),
)
def mlp_forward(x, prepped, out_dim, block_m=512, out_dtype=jnp.bfloat16,
                hidden_activation="relu", output_activation="sigmoid"):
    M, K = x.shape
    n_linear = len(prepped)
    assert prepped[0][0].shape[0] == K, "x feature dim must match first weight"
    dims_pad = [K] + [w.shape[1] for (w, _) in prepped]

    # Batch tiling: block_m=512 amortizes the ~0.35us per-step overhead and is
    # a multiple of 256 (full MXU rows on v6e/v7x); large batches give >=2
    # grid steps so the "parallel" axis shards across v7x's two TensorCores.
    if M <= block_m:
        bm = _round_up(M, SUBLANE)
    else:
        bm = block_m
    m_pad = _round_up(M, bm)

    x_p = jnp.pad(x.astype(jnp.float32), ((0, m_pad - M), (0, 0))
                  ).astype(jnp.bfloat16)

    # BlockSpecs: tile x/out over M; weights/biases resident (constant
    # index_map) and single-buffered (double buffering buys nothing there).
    resident = pl.Buffered(1)
    in_specs = [pl.BlockSpec((bm, K), lambda i: (i, 0))]
    flat_args = [x_p]
    for (w_p, b_p) in prepped:
        in_specs.append(pl.BlockSpec(w_p.shape, lambda i: (0, 0),
                                     pipeline_mode=resident))
        in_specs.append(pl.BlockSpec(b_p.shape, lambda i: (0, 0),
                                     pipeline_mode=resident))
        flat_args.extend([w_p, b_p])
    out_specs = pl.BlockSpec((bm, dims_pad[-1]), lambda i: (i, 0))

    # VMEM budget: resident bf16 weights + f32 biases, double-buffered x/out
    # tiles, f32 intermediates; clamp to v7x's 64 MiB physical VMEM.
    w_bytes = sum(w.size * 2 + b.size * 4 for (w, b) in prepped)
    io_bytes = (2 * bm * K * 2
                + 2 * bm * dims_pad[-1] * jnp.dtype(out_dtype).itemsize)
    h_bytes = 2 * bm * max(dims_pad) * 4
    vmem_limit = int(min(64 * 2**20,
                         max(32 * 2**20, 1.5 * (w_bytes + io_bytes + h_bytes))))
    # TODO(synk): if the bf16 weight set approaches ~40-50 MiB (very large
    # input_dim), K-tile the first matmul over an extra "arbitrary" grid axis
    # with a VMEM f32 accumulator instead of keeping W1 fully resident.

    kernel = functools.partial(
        _mlp_fused_kernel,
        n_linear=n_linear,
        hidden_activation=hidden_activation,
        output_activation=output_activation,
    )

    out_p = pl.pallas_call(
        kernel,
        out_shape=jax.ShapeDtypeStruct((m_pad, dims_pad[-1]), out_dtype),
        grid=(m_pad // bm,),
        in_specs=in_specs,
        out_specs=out_specs,
        compiler_params=pltpu.CompilerParams(
            dimension_semantics=("parallel",),   # M tiles -> both TCs on v7x
            vmem_limit_bytes=vmem_limit,
        ),
    )(*flat_args)

    # Strip batch padding and padded output columns (sigmoid(0)=0.5 junk).
    return out_p[:M, :out_dim]


# ----------------------------------------------------------------------------
# Parameter init (mirrors MLP.init_weights)
# ----------------------------------------------------------------------------
def xavier_uniform(key, fan_in, fan_out):
    bound = jnp.sqrt(6.0 / (fan_in + fan_out))
    return jax.random.uniform(key, (fan_in, fan_out), jnp.float32,
                              minval=-bound, maxval=bound)


def init_mlp_params(key, input_dim, hidden_dim, output_dim, hidden_layers):
    dims = [input_dim] + [hidden_dim] * hidden_layers + [output_dim]
    params = []
    keys = jax.random.split(key, len(dims) - 1)
    for li in range(len(dims) - 1):
        d_in, d_out = dims[li], dims[li + 1]
        if li == len(dims) - 2:
            # output layer: normal(0, 0.01), zero bias
            w = 0.01 * jax.random.normal(keys[li], (d_in, d_out), jnp.float32)
        else:
            # hidden layers: xavier uniform, zero bias
            w = xavier_uniform(keys[li], d_in, d_out)
        params.append((w, jnp.zeros((d_out,), jnp.float32)))
    return params


# ----------------------------------------------------------------------------
if __name__ == "__main__":
    # Config consistent with the module: input_dim=32, hidden_dim=64,
    # output_dim=8, hidden_layers=2, relu hidden act, sigmoid output act,
    # dropout identity at inference.
    input_dim, hidden_dim, output_dim, hidden_layers = 32, 64, 8, 2
    batch = 8

    key = jax.random.PRNGKey(0)
    kx, kp = jax.random.split(key)
    x = jax.random.normal(kx, (batch, input_dim), jnp.float32)
    params = init_mlp_params(kp, input_dim, hidden_dim, output_dim, hidden_layers)

    prepped, out_dim = prepare_params(params)   # one-time, outside hot path
    out = mlp_forward(x, prepped, out_dim=out_dim)
    out = jax.block_until_ready(out)

    # Plain-JAX f32 reference.
    ref = x
    for li, (w, b) in enumerate(params):
        ref = jnp.dot(ref, w, precision=jax.lax.Precision.HIGHEST) + b
        if li < len(params) - 1:
            ref = jnp.maximum(ref, 0.0)
        else:
            ref = jax.nn.sigmoid(ref)

    assert out.shape == (batch, output_dim)
    # bf16 MXU inputs + bf16 output + approx reciprocal => loosened tolerance.
    assert jnp.allclose(out.astype(jnp.float32), ref, atol=2e-2), "mismatch vs reference"

    print("KERNEL_OK")
</pallas_src>

<mosaic_0001>
module attributes {stable_mosaic.version = 11 : i64} {
  func.func @_mlp_fused_kernel(%arg0: i32, %arg1: memref<8x32xbf16, #tpu.memory_space<vmem>>, %arg2: memref<32x128xbf16, #tpu.memory_space<vmem>>, %arg3: memref<1x128xf32, #tpu.memory_space<vmem>>, %arg4: memref<128x128xbf16, #tpu.memory_space<vmem>>, %arg5: memref<1x128xf32, #tpu.memory_space<vmem>>, %arg6: memref<128x128xbf16, #tpu.memory_space<vmem>>, %arg7: memref<1x128xf32, #tpu.memory_space<vmem>>, %arg8: memref<8x128xbf16, #tpu.memory_space<vmem>>) attributes {dimension_semantics = [#tpu.dimension_semantics<parallel>], iteration_bounds = array<i64: 1>, scalar_prefetch = 0 : i64, scratch_operands = 0 : i64, tpu.core_type = #tpu.core_type<tc>, window_params = [{transform_indices = @transform_0, window_bounds = array<i64: 8, 32>}, {pipeline_mode = #tpu.pipeline_mode<synchronous>, transform_indices = @transform_1, window_bounds = array<i64: 32, 128>}, {pipeline_mode = #tpu.pipeline_mode<synchronous>, transform_indices = @transform_2, window_bounds = array<i64: 1, 128>}, {pipeline_mode = #tpu.pipeline_mode<synchronous>, transform_indices = @transform_3, window_bounds = array<i64: 128, 128>}, {pipeline_mode = #tpu.pipeline_mode<synchronous>, transform_indices = @transform_4, window_bounds = array<i64: 1, 128>}, {pipeline_mode = #tpu.pipeline_mode<synchronous>, transform_indices = @transform_5, window_bounds = array<i64: 128, 128>}, {pipeline_mode = #tpu.pipeline_mode<synchronous>, transform_indices = @transform_6, window_bounds = array<i64: 1, 128>}, {transform_indices = @transform_7, window_bounds = array<i64: 8, 128>}]} {
    %c0 = arith.constant 0 : index
    %c0_0 = arith.constant 0 : index
    %0 = vector.load %arg1[%c0, %c0_0] : memref<8x32xbf16, #tpu.memory_space<vmem>>, vector<8x32xbf16>
    %c0_1 = arith.constant 0 : index
    %c0_2 = arith.constant 0 : index
    %1 = vector.load %arg2[%c0_1, %c0_2] : memref<32x128xbf16, #tpu.memory_space<vmem>>, vector<32x128xbf16>
    %c0_3 = arith.constant 0 : index
    %c0_4 = arith.constant 0 : index
    %2 = vector.load %arg3[%c0_3, %c0_4] : memref<1x128xf32, #tpu.memory_space<vmem>>, vector<1x128xf32>
    %cst = arith.constant dense<0.000000e+00> : vector<8x128xf32>
    %3 = tpu.matmul %0, %1, %cst {dimension_numbers = #tpu.dot_dimension_numbers<[1], [0], [0], [1], [0, 0, 1, 1], [], []>} : vector<8x32xbf16>, vector<32x128xbf16>, vector<8x128xf32> -> vector<8x128xf32>
    %4 = vector.broadcast %2 : vector<1x128xf32> to vector<8x128xf32>
    %5 = arith.addf %3, %4 : vector<8x128xf32>
    %cst_5 = arith.constant 0.000000e+00 : f32
    %6 = vector.broadcast %cst_5 : f32 to vector<8x128xf32>
    %7 = arith.maximumf %5, %6 : vector<8x128xf32>
    %c0_6 = arith.constant 0 : index
    %c0_7 = arith.constant 0 : index
    %8 = vector.load %arg4[%c0_6, %c0_7] : memref<128x128xbf16, #tpu.memory_space<vmem>>, vector<128x128xbf16>
    %c0_8 = arith.constant 0 : index
    %c0_9 = arith.constant 0 : index
    %9 = vector.load %arg5[%c0_8, %c0_9] : memref<1x128xf32, #tpu.memory_space<vmem>>, vector<1x128xf32>
    %10 = arith.truncf %7 : vector<8x128xf32> to vector<8x128xbf16>
    %cst_10 = arith.constant dense<0.000000e+00> : vector<8x128xf32>
    %11 = tpu.matmul %10, %8, %cst_10 {dimension_numbers = #tpu.dot_dimension_numbers<[1], [0], [0], [1], [0, 0, 1, 1], [], []>} : vector<8x128xbf16>, vector<128x128xbf16>, vector<8x128xf32> -> vector<8x128xf32>
    %12 = vector.broadcast %9 : vector<1x128xf32> to vector<8x128xf32>
    %13 = arith.addf %11, %12 : vector<8x128xf32>
    %cst_11 = arith.constant 0.000000e+00 : f32
    %14 = vector.broadcast %cst_11 : f32 to vector<8x128xf32>
    %15 = arith.maximumf %13, %14 : vector<8x128xf32>
    %c0_12 = arith.constant 0 : index
    %c0_13 = arith.constant 0 : index
    %16 = vector.load %arg6[%c0_12, %c0_13] : memref<128x128xbf16, #tpu.memory_space<vmem>>, vector<128x128xbf16>
    %c0_14 = arith.constant 0 : index
    %c0_15 = arith.constant 0 : index
    %17 = vector.load %arg7[%c0_14, %c0_15] : memref<1x128xf32, #tpu.memory_space<vmem>>, vector<1x128xf32>
    %18 = arith.truncf %15 : vector<8x128xf32> to vector<8x128xbf16>
    %cst_16 = arith.constant dense<0.000000e+00> : vector<8x128xf32>
    %19 = tpu.matmul %18, %16, %cst_16 {dimension_numbers = #tpu.dot_dimension_numbers<[1], [0], [0], [1], [0, 0, 1, 1], [], []>} : vector<8x128xbf16>, vector<128x128xbf16>, vector<8x128xf32> -> vector<8x128xf32>
    %20 = vector.broadcast %17 : vector<1x128xf32> to vector<8x128xf32>
    %21 = arith.addf %19, %20 : vector<8x128xf32>
    %cst_17 = arith.constant 0.000000e+00 : f32
    %22 = vector.broadcast %cst_17 : f32 to vector<8x128xf32>
    %23 = arith.subf %22, %21 : vector<8x128xf32>
    %24 = math.exp %23 : vector<8x128xf32>
    %cst_18 = arith.constant 1.000000e+00 : f32
    %25 = vector.broadcast %cst_18 : f32 to vector<8x128xf32>
    %26 = arith.addf %25, %24 : vector<8x128xf32>
    %27 = tpu.reciprocal %26 {approx = true} : vector<8x128xf32> -> vector<8x128xf32>
    %28 = arith.truncf %27 : vector<8x128xf32> to vector<8x128xbf16>
    %c0_19 = arith.constant 0 : index
    %c0_20 = arith.constant 0 : index
    %29 = vector.load %arg8[%c0_19, %c0_20] : memref<8x128xbf16, #tpu.memory_space<vmem>>, vector<8x128xbf16>
    tpu.vector_store %arg8[%c0_19, %c0_20], %28 {strides = array<i32>} : memref<8x128xbf16, #tpu.memory_space<vmem>>, vector<8x128xbf16>,
    return
  }
  func.func @transform_0(%arg0: i32) -> (i32, i32) {
    %c0_i32 = arith.constant 0 : i32
    %c0_i32_0 = arith.constant 0 : i32
    return %arg0, %c0_i32 : i32, i32
  }
  func.func @transform_1(%arg0: i32) -> (i32, i32) {
    %c0_i32 = arith.constant 0 : i32
    %c0_i32_0 = arith.constant 0 : i32
    %c0_i32_1 = arith.constant 0 : i32
    return %c0_i32, %c0_i32_0 : i32, i32
  }
  func.func @transform_2(%arg0: i32) -> (i32, i32) {
    %c0_i32 = arith.constant 0 : i32
    %c0_i32_0 = arith.constant 0 : i32
    %c0_i32_1 = arith.constant 0 : i32
    return %c0_i32, %c0_i32_0 : i32, i32
  }
  func.func @transform_3(%arg0: i32) -> (i32, i32) {
    %c0_i32 = arith.constant 0 : i32
    %c0_i32_0 = arith.constant 0 : i32
    %c0_i32_1 = arith.constant 0 : i32
    return %c0_i32, %c0_i32_0 : i32, i32
  }
  func.func @transform_4(%arg0: i32) -> (i32, i32) {
    %c0_i32 = arith.constant 0 : i32
    %c0_i32_0 = arith.constant 0 : i32
    %c0_i32_1 = arith.constant 0 : i32
    return %c0_i32, %c0_i32_0 : i32, i32
  }
  func.func @transform_5(%arg0: i32) -> (i32, i32) {
    %c0_i32 = arith.constant 0 : i32
    %c0_i32_0 = arith.constant 0 : i32
    %c0_i32_1 = arith.constant 0 : i32
    return %c0_i32, %c0_i32_0 : i32, i32
  }
  func.func @transform_6(%arg0: i32) -> (i32, i32) {
    %c0_i32 = arith.constant 0 : i32
    %c0_i32_0 = arith.constant 0 : i32
    %c0_i32_1 = arith.constant 0 : i32
    return %c0_i32, %c0_i32_0 : i32, i32
  }
  func.func @transform_7(%arg0: i32) -> (i32, i32) {
    %c0_i32 = arith.constant 0 : i32
    %c0_i32_0 = arith.constant 0 : i32
    return %arg0, %c0_i32 : i32, i32
  }
}

</mosaic_0001>

<bundles_post_ra>
// kernel: mlp_forward.1
= control target key start
LH: loop header
LB: loop body
LE: loop exit
PB: predicated region body
PF: predicated region fallthrough
CT: control target
= control target key end

     0   :  { %12 = vsyncpa [#allocation3], 0  ;;  %s689_s0 = inlined_call_operand.vmem [shape: bf16[8,32], index: 0, kind: input, shape index: {}]   ;;  %s690_s1 = inlined_call_operand.hbm [shape: bf16[32,128], index: 1, kind: input, shape index: {}]   ;;  %s691_s2 = inlined_call_operand.vmem [shape: f32[1,128], index: 2, kind: input, shape index: {}]   ;;  %s692_s3 = inlined_call_operand.hbm [shape: bf16[128,128], index: 3, kind: input, shape index: {}]   ;;  %s693_s4 = inlined_call_operand.vmem [shape: f32[1,128], index: 4, kind: input, shape index: {}]   ;;  %s694_s5 = inlined_call_operand.hbm [shape: bf16[128,128], index: 5, kind: input, shape index: {}]   ;;  %s695_s6 = inlined_call_operand.vmem [shape: f32[1,128], index: 6, kind: input, shape index: {}]   ;;  %s696_s7 = inlined_call_operand.hbm [shape: bf16[8,128], index: 7, kind: output, shape index: {}]  }
   0x1   :  { %13 = vsyncpa [#allocation6], 0 }
   0x2   :  { %14 = vsyncpa [#allocation4], 0  ;;  %s593_s24 = smov [#allocation5]   ;;  %s594_s26 = smov [#allocation2]  }
   0x3   :  { %s36_s25 = sshll.u32 %s593_s24, 4  ;;  %s22_s27 = sshll.u32 %s594_s26, 4  ;;  %s37_s25 = int_to_ptr.vmem [resolvable:$true] %s36_s25  ;;  %s23_s27 = int_to_ptr.vmem [resolvable:$true] %s22_s27 }
   0x4   :  { %s515_s28 = scalar_lea.vmem %s37_s25, 1024  ;;  %p520_p1 = scmp.lt.s32.totalorder %s37_s25, %s37_s25 }
   0x5   :  { %p516_p0 = scmp.ne.s32.totalorder %s37_s25, %s515_s28  ;;  %p521_p2 = scmp.lt.s32.totalorder %s515_s28, %s515_s28 }
   0x7   :  { %p522_p3 = por %p521_p2, %p520_p1 }
   0x9   :  { %p523_p4 = pnand %p522_p3, %p516_p0 }
   0xb   :  { %526 = shalt.err (!%p523_p4)
}
   0xc   :  { %s595_s29 = smov 64   ;;  %s596_s30 = smov 4  }
   0xd   :  { %42 = dma.hbm_to_vmem [thread:$0]  %s692_s3, 1024, %s37_s25, [#allocation6], %s595_s29, %s595_s29, %s596_s30  }
   0xe   :  { %s535_s10 = scalar_lea.vmem %s23_s27, 256  ;;  %p540_p6 = scmp.lt.s32.totalorder %s23_s27, %s23_s27 }
   0xf   :  { %p536_p5 = scmp.ne.s32.totalorder %s23_s27, %s535_s10  ;;  %p541_p7 = scmp.lt.s32.totalorder %s535_s10, %s535_s10 }
  0x11   :  { %p542_p8 = por %p541_p7, %p540_p6 }
  0x13   :  { %p543_p9 = pnand %p542_p8, %p536_p5 }
  0x15   :  { %546 = shalt.err (!%p543_p9)
}
  0x16   :  { %28 = dma.hbm_to_vmem [thread:$0]  %s690_s1, 256, %s23_s27, [#allocation3], %s595_s29, %s595_s29, %s596_s30  }
  0x17   :  { %s597_s13 = smov [#allocation7]  }
  0x18   :  { %s50_s14 = sshll.u32 %s597_s13, 4  ;;  %s51_s14 = int_to_ptr.vmem [resolvable:$true] %s50_s14 }
  0x19   :  { %s555_s15 = scalar_lea.vmem %s51_s14, 1024  ;;  %p560_p11 = scmp.lt.s32.totalorder %s51_s14, %s51_s14 }
  0x1a   :  { %p556_p10 = scmp.ne.s32.totalorder %s51_s14, %s555_s15  ;;  %p561_p12 = scmp.lt.s32.totalorder %s555_s15, %s555_s15 }
  0x1c   :  { %p562_p13 = por %p561_p12, %p560_p11 }
  0x1e   :  { %p563_p0 = pnand %p562_p13, %p556_p10 }
  0x20   :  { %566 = shalt.err (!%p563_p0)
}
  0x21   :  { %56 = dma.hbm_to_vmem [thread:$0]  %s694_s5, 1024, %s51_s14, [#allocation6], %s595_s29, %s595_s29, %s596_s30  }
  0x22   :  { %587 = dma.done.wait [#allocation3], 256  }
  0x23   :  { %588 = vsyncadd [#allocation3], 4294967040 }
  0x24   :  { %589 = dma.done.wait [#allocation6], 2048  }
  0x25   :  { %590 = vsyncadd [#allocation6], 4294965248  ;;  %v598_v0 = vmov 0.0   ;;  %vm599_vm0 = vmmov 0   ;;  %v485_v1 = vld [vmem:[#allocation2 + $0x8] sm:$0xff]   ;;  %v486_v2 = vld [vmem:[#allocation2] sm:$0xff]  }
  0x26   :  { %429 = vmatprep.subr.bf16.mxu0 %v598_v0  ;;  %433 = vmatprep.mubr.msk.bf16.mxu0 %vm599_vm0, %v598_v0  ;;  %v487_v3 = vld [vmem:[#allocation5 + $0x38] sm:$0xff]   ;;  %vm93_vm1 = vcmask 261120   ;;  %v488_v4 = vld [vmem:[#allocation5 + $0x30] sm:$0xff]   ;;  %v489_v6 = vld [vmem:[#allocation5 + $0x28] sm:$0xff]  }
  0x27   :  { %437 = vmatprep.subr.bf16.mxu1 %v598_v0  ;;  %453 = vmatprep.mubr.msk.bf16.mxu1 %vm599_vm0, %v598_v0  ;;  %v69_v5 = vld [vmem:[%s689_s0] sm:$0xf]  ;;  %v490_v7 = vld [vmem:[#allocation5 + $0x20] sm:$0xff]   ;;  %v491_v8 = vld [vmem:[#allocation5 + $0x18] sm:$0xff]  }
  0x28   :  { %430 = vmatpush3.bf16.msra.mxu0 %v485_v1  ;;  %438 = vmatpush3.bf16.msra.mxu1 %v487_v3  ;;  %v492_v9 = vld [vmem:[#allocation5 + $0x10] sm:$0xff]   ;;  %v493_v10 = vld [vmem:[#allocation5 + $0x8] sm:$0xff]   ;;  %v494_v11 = vld [vmem:[#allocation5] sm:$0xff]  }
  0x29   :  { %431 = vmatprep.subr.bf16.mxu0 %v598_v0  ;;  %439 = vmatprep.subr.bf16.mxu1 %v598_v0  ;;  %v495_v12 = vld [vmem:[#allocation7 + $0x38] sm:$0xff]   ;;  %v496_v13 = vld [vmem:[#allocation7 + $0x30] sm:$0xff]   ;;  %v497_v14 = vld [vmem:[#allocation7 + $0x28] sm:$0xff]  }
  0x2a   :  { %v498_v15 = vld [vmem:[#allocation7 + $0x20] sm:$0xff]   ;;  %v499_v16 = vld [vmem:[#allocation7 + $0x18] sm:$0xff]   ;;  %v500_v17 = vld [vmem:[#allocation7 + $0x10] sm:$0xff]  }
  0x2b   :  { %v386_v18 = vld [vmem:[%s691_s2] ss:$0 sm:$0xff]  ;;  %v501_v26 = vld [vmem:[#allocation7 + $0x8] sm:$0xff]   ;;  %v502_v27 = vld [vmem:[#allocation7] sm:$0xff]  }
  0x2c   :  { %432 = vmatpush3.bf16.msra.mxu0 %v486_v2  ;;  %440 = vmatpush3.bf16.msra.mxu1 %v488_v4  ;;  %v390_v28 = vld [vmem:[%s693_s4] ss:$0 sm:$0xff]  ;;  %s600_s4 = smov [#allocation8]  }
  0x2d   :  { %457 = vmatprep.subr.bf16.mxu0 %v598_v0  ;;  %441 = vmatprep.subr.bf16.mxu1 %v598_v0  ;;  %v399_v36 = vld [vmem:[%s695_s6] ss:$0 sm:$0xff]  ;;  %s376_s21 = sshll.u32 %s600_s4, 4  ;;  %s377_s21 = int_to_ptr.vmem [resolvable:$true] %s376_s21 }
  0x2e   :  { %s567_s22 = scalar_lea.vmem %s377_s21, 64  ;;  %p572_p2 = scmp.lt.s32.totalorder %s377_s21, %s377_s21 }
  0x2f   :  { %434 = vmatmul.mubr.msk.bf16.vlgmr.msra.gmra.mxu0 %vm93_vm1, %v69_v5  ;;  %p568_p1 = scmp.ne.s32.totalorder %s377_s21, %s567_s22  ;;  %p573_p3 = scmp.lt.s32.totalorder %s567_s22, %s567_s22 }
  0x30   :  { %473 = vmatprep.mubr.msk.bf16.mxu0 %vm599_vm0, %v598_v0  ;;  %442 = vmatpush3.bf16.msra.mxu1 %v489_v6 }
  0x31   :  { %443 = vmatprep.subr.bf16.mxu1 %v598_v0  ;;  %458 = vmatpush3.bf16.msra.mxu0 %v495_v12  ;;  %p574_p4 = por %p573_p3, %p572_p2 }
  0x32   :  { %459 = vmatprep.subr.bf16.mxu0 %v598_v0 }
  0x33   :  { %p575_p5 = pnand %p574_p4, %p568_p1 }
  0x34   :  { %444 = vmatpush3.bf16.msra.mxu1 %v490_v7 }
  0x35   :  { %445 = vmatprep.subr.bf16.mxu1 %v598_v0  ;;  %460 = vmatpush3.bf16.msra.mxu0 %v496_v13 }
  0x36   :  { %461 = vmatprep.subr.bf16.mxu0 %v598_v0 }
  0x38   :  { %446 = vmatpush3.bf16.msra.mxu1 %v491_v8 }
  0x39   :  { %447 = vmatprep.subr.bf16.mxu1 %v598_v0  ;;  %462 = vmatpush3.bf16.msra.mxu0 %v497_v14 }
  0x3a   :  { %463 = vmatprep.subr.bf16.mxu0 %v598_v0 }
  0x3c   :  { %448 = vmatpush3.bf16.msra.mxu1 %v492_v9 }
  0x3d   :  { %449 = vmatprep.subr.bf16.mxu1 %v598_v0  ;;  %464 = vmatpush3.bf16.msra.mxu0 %v498_v15 }
  0x3e   :  { %465 = vmatprep.subr.bf16.mxu0 %v598_v0 }
  0x40   :  { %450 = vmatpush3.bf16.msra.mxu1 %v493_v10 }
  0x41   :  { %451 = vmatprep.subr.bf16.mxu1 %v598_v0  ;;  %466 = vmatpush3.bf16.msra.mxu0 %v499_v16 }
  0x42   :  { %467 = vmatprep.subr.bf16.mxu0 %v598_v0 }
  0x44   :  { %452 = vmatpush3.bf16.msra.mxu1 %v494_v11 }
  0x45   :  { %468 = vmatpush3.bf16.msra.mxu0 %v500_v17 }
  0x46   :  { %469 = vmatprep.subr.bf16.mxu0 %v598_v0 }
  0x49   :  { %470 = vmatpush3.bf16.msra.mxu0 %v501_v26 }
  0x4a   :  { %471 = vmatprep.subr.bf16.mxu0 %v598_v0 }
  0x4d   :  { %472 = vmatpush3.bf16.msra.mxu0 %v502_v27 }
  0xef   :  { %v131_v19 = vpop.f32.mrf.mxu0 }
  0xf0   :  { %v132_v20 = vadd.f32 %v386_v18, %v131_v19 }
  0xf1   :  { %v435_v21 = vpop.f32.mrf.mxu0 }
  0xf2   :  { %v137_v22 = vmax.f32 %v132_v20, 0.0 }
  0xf3   :  { %v134_v23 = vpop.f32.mrf.mxu0 }
  0xf4   :  { %v155_v24 = vpack.c.bf16 %v137_v22, %v137_v22 }
  0xf5   :  { %v436_v25 = vpop.f32.mrf.mxu0 }
  0xf6   :  { %454 = vmatmul.mubr.bf16.vlgmr.msra.gmra.mxu1 %v155_v24 }
 0x1b6   :  { %v244_v29 = vpop.f32.mrf.mxu1 }
 0x1b7   :  { %v245_v30 = vadd.f32 %v390_v28, %v244_v29 }
 0x1b8   :  { %v455_v31 = vpop.f32.mrf.mxu1 }
 0x1b9   :  { %v250_v32 = vmax.f32 %v245_v30, 0.0 }
 0x1ba   :  { %v247_v33 = vpop.f32.mrf.mxu1 }
 0x1bb   :  { %v268_v34 = vpack.c.bf16 %v250_v32, %v250_v32 }
 0x1bc   :  { %v456_v35 = vpop.f32.mrf.mxu1 }
 0x1bd   :  { %474 = vmatmul.mubr.bf16.vlgmr.msra.gmra.mxu0 %v268_v34 }
 0x27d   :  { %v357_v37 = vpop.f32.mrf.mxu0 }
 0x27e   :  { %v358_v38 = vadd.f32 %v399_v36, %v357_v37 }
 0x27f   :  { %v475_v39 = vpop.f32.mrf.mxu0 }
 0x280   :  { %v363_v40 = vsub.f32 0.0, %v358_v38 }
 0x281   :  { %v360_v41 = vpop.f32.mrf.mxu0 }
 0x282   :  { %v364_v42 = vmul.f32 1.442695, %v363_v40 }
 0x283   :  { %v476_v43 = vpop.f32.mrf.mxu0 }
 0x284   :  { %503 = vpow2.f32 %v364_v42 }
 0x291   :  { %v504_v44 = vpop.eup %503 }
 0x292   :  { %v366_v45 = vadd.f32 1.0, %v504_v44 }
 0x294   :  { %505 = vrcp.f32 %v366_v45 }
 0x2a1   :  { %v506_v46 = vpop.eup %505 }
 0x2a2   :  { %v368_v47 = vpack.c.bf16 %v506_v46, %v506_v46 }
 0x2a4   :  { %369 = vst [vmem:[#allocation8] sm:$0xf] %v368_v47 }
 0x2a5   :  { %578 = shalt.err (!%p575_p5)
}
 0x2a6   :  { %379 = dma.vmem_to_hbm [thread:$0]  %s377_s21, 64, %s696_s7, [#allocation4]  }
 0x2a7   :  { %591 = dma.done.wait [#allocation4], 64  }
 0x2a8   :  { %592 = vsyncadd [#allocation4], 4294967232 }
 0x2a9   :  { %383 = vsyncpa [#allocation3], 1 }
 0x2aa   :  { %384 = vsyncpa [#allocation6], 1 }
 0x2ab   :  { %385 = vsyncpa [#allocation4], 1 }

</bundles_post_ra>
